<compile_context>
chip_gen: v5e
topology: v5e:2x2
jax: 0.10.0
libtpu: 0.0.40
codegen_flags: <defaults>
</compile_context>

<pallas_src>
import functools

import jax
import jax.numpy as jnp
from jax.experimental import pallas as pl
from jax.experimental.pallas import tpu as pltpu

EPS = 1e-5                       # torch.nn.GroupNorm default eps
_VMEM_LIMIT = 48 * 1024 * 1024   # > default scoped limit, < v7x 64 MiB physical


# ---------------------------------------------------------------------------
# Small helpers
# ---------------------------------------------------------------------------
def _spatial_tile(p, target=1024):
    """Largest divisor of p that is <= target and a multiple of 128.

    The conv1 input is read in (flattened) NCHW layout, so the spatial tile
    sits on the lane axis and must be a multiple of 128 (or the full extent).
    """
    if p <= target:
        return p
    for d in range(target, 127, -1):
        if p % d == 0 and d % 128 == 0:
            return d
    # TODO(synk): non-128-divisible P could use pl.cdiv + a masked last tile.
    return p


def _group_mask(c, g):
    cg = c // g
    return (jnp.arange(c)[:, None] // cg == jnp.arange(g)[None, :]).astype(
        jnp.float32)


def _gn_group_stats(y, mask, mask_t, n_per_group):
    """Exact per-group mean / inv-std for resident f32 (M, C) activations."""
    s_c = jnp.sum(y, axis=0, keepdims=True)                           # (1, C)
    mu_g = jnp.dot(s_c, mask, preferred_element_type=jnp.float32) / n_per_group
    mu_c = jnp.dot(mu_g, mask_t, preferred_element_type=jnp.float32)
    yc = y - mu_c
    var_g = jnp.dot(jnp.sum(yc * yc, axis=0, keepdims=True), mask,
                    preferred_element_type=jnp.float32) / n_per_group
    inv_c = jnp.dot(jax.lax.rsqrt(var_g + EPS), mask_t,
                    preferred_element_type=jnp.float32)
    return mu_c, inv_c


# ---------------------------------------------------------------------------
# Kernel 1: conv1 (1x1) + streaming GroupNorm-1 statistics.
# Grid = (N, P//tp); the P-tile axis is the (last, "arbitrary") reduction axis.
# ---------------------------------------------------------------------------
def _conv1x1_gn_stats_kernel(x_ref, w_ref, mask_ref, mask_t_ref, gamma_ref,
                             beta_ref, y_ref, scale_ref, shift_ref,
                             ref_sc, sum_sc, sq_sc, *,
                             tile_p, total_p, n_per_group, compute_dtype):
    j = pl.program_id(1)

    # NCHW tile (Cin, tp): transpose on the XLU so channels land on lanes; the
    # bf16 cast happens in-kernel (no wrapper-level HBM cast of x).
    x_t = jnp.transpose(x_ref[0]).astype(compute_dtype)              # (tp, Cin)
    y = jnp.dot(x_t, w_ref[...], preferred_element_type=jnp.float32)  # (tp, C)

    @pl.when(j == 0)
    def _():
        # Per-channel reference (first-tile mean): keeps the streamed
        # sum / sum-of-squares accumulation well conditioned.
        ref_sc[...] = jnp.sum(y, axis=0, keepdims=True) * (1.0 / tile_p)
        sum_sc[...] = jnp.zeros_like(sum_sc)
        sq_sc[...] = jnp.zeros_like(sq_sc)

    yc = y - ref_sc[...]
    sum_sc[...] += jnp.sum(yc, axis=0, keepdims=True)
    sq_sc[...] += jnp.sum(yc * yc, axis=0, keepdims=True)
    y_ref[0] = y.astype(y_ref.dtype)

    @pl.when(j == pl.num_programs(1) - 1)
    def _():
        r = ref_sc[...]
        s = sum_sc[...]
        q = sq_sc[...]
        mask = mask_ref[...]
        mask_t = mask_t_ref[...]
        ch_sum = s + total_p * r                                      # (1, C)
        mu_g = jnp.dot(ch_sum, mask,
                       preferred_element_type=jnp.float32) / n_per_group
        mu_c = jnp.dot(mu_g, mask_t, preferred_element_type=jnp.float32)
        d = r - mu_c
        # sum over the group of (y - mu_g)^2, expanded around the per-channel
        # reference r: Q + 2*(r-mu)*S + P*(r-mu)^2  (no large cancellation).
        v_c = q + 2.0 * d * s + total_p * d * d
        var_g = jnp.maximum(
            jnp.dot(v_c, mask,
                    preferred_element_type=jnp.float32) / n_per_group, 0.0)
        inv_c = jnp.dot(jax.lax.rsqrt(var_g + EPS), mask_t,
                        preferred_element_type=jnp.float32)
        scale = inv_c * gamma_ref[...]
        scale_ref[0] = scale
        shift_ref[0] = beta_ref[...] - mu_c * scale


def conv1x1_gn_stats(x_cp, w, gamma, beta, ngroups, compute_dtype,
                     tile_p=None):
    """conv1 (1x1) + GroupNorm-1 statistics.

    x_cp: (N, Cin, P) f32 (NCHW with HxW flattened).  Returns raw y1
    (N, P, Cout) in compute_dtype plus per-sample f32 (scale, shift) that fold
    GN1 normalization + affine into one multiply-add.
    """
    n, c_in, p = x_cp.shape
    c_out = w.shape[1]
    tp = tile_p or _spatial_tile(p)
    assert p % tp == 0, (p, tp)
    mask = _group_mask(c_out, ngroups)
    mask_t = jnp.transpose(mask)
    gamma2 = gamma.reshape(1, c_out).astype(jnp.float32)
    beta2 = beta.reshape(1, c_out).astype(jnp.float32)
    kernel = functools.partial(
        _conv1x1_gn_stats_kernel, tile_p=float(tp), total_p=float(p),
        n_per_group=float((c_out // ngroups) * p), compute_dtype=compute_dtype)
    cd_size = jnp.dtype(compute_dtype).itemsize
    return pl.pallas_call(
        kernel,
        out_shape=(jax.ShapeDtypeStruct((n, p, c_out), compute_dtype),
                   jax.ShapeDtypeStruct((n, 1, c_out), jnp.float32),
                   jax.ShapeDtypeStruct((n, 1, c_out), jnp.float32)),
        grid_spec=pltpu.PrefetchScalarGridSpec(
            num_scalar_prefetch=0,
            grid=(n, p // tp),
            in_specs=[
                pl.BlockSpec((1, c_in, tp), lambda i, j: (i, 0, j)),
                pl.BlockSpec((c_in, c_out), lambda i, j: (0, 0)),
                pl.BlockSpec((c_out, ngroups), lambda i, j: (0, 0)),
                pl.BlockSpec((ngroups, c_out), lambda i, j: (0, 0)),
                pl.BlockSpec((1, c_out), lambda i, j: (0, 0)),
                pl.BlockSpec((1, c_out), lambda i, j: (0, 0)),
            ],
            out_specs=(
                pl.BlockSpec((1, tp, c_out), lambda i, j: (i, j, 0)),
                pl.BlockSpec((1, 1, c_out), lambda i, j: (i, 0, 0)),
                pl.BlockSpec((1, 1, c_out), lambda i, j: (i, 0, 0)),
            ),
            scratch_shapes=[
                pltpu.VMEM((1, c_out), jnp.float32),   # per-channel reference
                pltpu.VMEM((1, c_out), jnp.float32),   # shifted sum
                pltpu.VMEM((1, c_out), jnp.float32),   # shifted sum of squares
            ],
        ),
        compiler_params=pltpu.CompilerParams(
            dimension_semantics=("parallel", "arbitrary"),
            vmem_limit_bytes=_VMEM_LIMIT),
        cost_estimate=pl.CostEstimate(
            flops=int(2 * n * p * c_in * c_out),
            transcendentals=int(n * ngroups),
            bytes_accessed=int(n * p * c_in * 4 + c_in * c_out * cd_size
                               + n * p * c_out * cd_size + n * 2 * c_out * 4)),
    )(x_cp, w, mask, mask_t, gamma2, beta2)


# ---------------------------------------------------------------------------
# Kernel 2: fused per-sample tail.
#   GN1 normalize+ReLU -> 3x3 conv (3 matmuls, K=3*C) -> GN2+ReLU ->
#   1x1 conv -> GN3 -> +residual -> ReLU -> NHWC->NCHW transpose.
# ---------------------------------------------------------------------------
def _fused_tail_kernel(y1_ref, s1_ref, t1_ref, res_ref, w2_ref, w3_ref,
                       m2_ref, m2t_ref, g2_ref, be2_ref,
                       m3_ref, m3t_ref, g3_ref, be3_ref,
                       out_ref, xq_ref, *,
                       n2_per_group, n3_per_group, compute_dtype):
    h, w, c2 = y1_ref.shape[1], y1_ref.shape[2], y1_ref.shape[3]
    hw = h * w

    # ---- stage-1 pass B (GN1 scale/shift + ReLU), fused into the halo fill --
    y1n = jnp.maximum(
        y1_ref[0].astype(jnp.float32) * s1_ref[0] + t1_ref[0],
        0.0).astype(compute_dtype)                                   # (h, w, c2)

    # kw-concatenated halo buffer: xq[r, col, kw*c2:(kw+1)*c2] = xpad[r, col+kw]
    # Only the 1-pixel border is zeroed; the interior is written with data.
    xq_ref[0] = jnp.zeros((w, 3 * c2), compute_dtype)
    xq_ref[h + 1] = jnp.zeros((w, 3 * c2), compute_dtype)
    xq_ref[1:h + 1, 0:1, 0:c2] = jnp.zeros((h, 1, c2), compute_dtype)
    xq_ref[1:h + 1, w - 1:w, 2 * c2:3 * c2] = jnp.zeros((h, 1, c2),
                                                        compute_dtype)
    xq_ref[1:h + 1, 1:w, 0:c2] = y1n[:, :w - 1, :]
    xq_ref[1:h + 1, :, c2:2 * c2] = y1n
    xq_ref[1:h + 1, 0:w - 1, 2 * c2:3 * c2] = y1n[:, 1:, :]

    # ---- conv2 (3x3, pad=1): three K=3*c2 matmuls over row-shifted views ----
    y2 = jnp.dot(xq_ref[0:h].reshape(hw, 3 * c2), w2_ref[0],
                 preferred_element_type=jnp.float32)
    for kh in (1, 2):
        y2 = y2 + jnp.dot(xq_ref[kh:kh + h].reshape(hw, 3 * c2), w2_ref[kh],
                          preferred_element_type=jnp.float32)

    # ---- GN2 (exact, activation resident) + ReLU ----
    mu2, inv2 = _gn_group_stats(y2, m2_ref[...], m2t_ref[...], n2_per_group)
    h2 = jnp.maximum((y2 - mu2) * (inv2 * g2_ref[...]) + be2_ref[...], 0.0)
    h2 = h2.astype(compute_dtype)

    # ---- conv3 (1x1) + GN3 (exact) while the activation is still resident ---
    y3 = jnp.dot(h2, w3_ref[...], preferred_element_type=jnp.float32)  # (hw,c4)
    mu3, inv3 = _gn_group_stats(y3, m3_ref[...], m3t_ref[...], n3_per_group)
    y3n = (y3 - mu3) * (inv3 * g3_ref[...]) + be3_ref[...]

    # ---- +residual (NCHW), ReLU, fused NHWC->NCHW transpose (XLU) ----
    out_t = jnp.transpose(y3n) + res_ref[0]                          # (c4, hw)
    out_ref[0] = jnp.maximum(out_t, 0.0).astype(out_ref.dtype)


def fused_conv_gn_residual(y1_nhwc, s1, t1, x_res, w2r, w3, gamma2, beta2,
                           gamma3, beta3, ngroups, compute_dtype):
    """Fused conv2(3x3)+GN2+ReLU, conv3(1x1)+GN3, +residual, ReLU, NCHW out."""
    n, h, w, c2 = y1_nhwc.shape
    c4 = w3.shape[1]
    hw = h * w
    mask2 = _group_mask(c2, ngroups)
    mask3 = _group_mask(c4, ngroups)
    g2 = gamma2.reshape(1, c2).astype(jnp.float32)
    b2 = beta2.reshape(1, c2).astype(jnp.float32)
    g3 = gamma3.reshape(1, c4).astype(jnp.float32)
    b3 = beta3.reshape(1, c4).astype(jnp.float32)
    kernel = functools.partial(
        _fused_tail_kernel,
        n2_per_group=float((c2 // ngroups) * hw),
        n3_per_group=float((c4 // ngroups) * hw),
        compute_dtype=compute_dtype)
    cd_size = jnp.dtype(compute_dtype).itemsize
    return pl.pallas_call(
        kernel,
        out_shape=jax.ShapeDtypeStruct((n, c4, hw), jnp.float32),
        grid_spec=pltpu.PrefetchScalarGridSpec(
            num_scalar_prefetch=0,
            grid=(n,),
            in_specs=[
                pl.BlockSpec((1, h, w, c2), lambda i: (i, 0, 0, 0)),
                pl.BlockSpec((1, 1, c2), lambda i: (i, 0, 0)),
                pl.BlockSpec((1, 1, c2), lambda i: (i, 0, 0)),
                pl.BlockSpec((1, c4, hw), lambda i: (i, 0, 0)),
                pl.BlockSpec((3, 3 * c2, c2), lambda i: (0, 0, 0)),
                pl.BlockSpec((c2, c4), lambda i: (0, 0)),
                pl.BlockSpec((c2, ngroups), lambda i: (0, 0)),
                pl.BlockSpec((ngroups, c2), lambda i: (0, 0)),
                pl.BlockSpec((1, c2), lambda i: (0, 0)),
                pl.BlockSpec((1, c2), lambda i: (0, 0)),
                pl.BlockSpec((c4, ngroups), lambda i: (0, 0)),
                pl.BlockSpec((ngroups, c4), lambda i: (0, 0)),
                pl.BlockSpec((1, c4), lambda i: (0, 0)),
                pl.BlockSpec((1, c4), lambda i: (0, 0)),
            ],
            out_specs=pl.BlockSpec((1, c4, hw), lambda i: (i, 0, 0)),
            scratch_shapes=[pltpu.VMEM((h + 2, w, 3 * c2), compute_dtype)],
        ),
        compiler_params=pltpu.CompilerParams(
            dimension_semantics=("parallel",),
            vmem_limit_bytes=_VMEM_LIMIT),
        cost_estimate=pl.CostEstimate(
            flops=int(2 * n * hw * (9 * c2 * c2 + c2 * c4)),
            transcendentals=int(2 * n * ngroups),
            bytes_accessed=int(n * hw * c2 * cd_size + 2 * n * hw * c4 * 4
                               + (9 * c2 * c2 + c2 * c4) * cd_size)),
    )(y1_nhwc, s1, t1, x_res, w2r, w3, mask2, jnp.transpose(mask2),
      g2, b2, mask3, jnp.transpose(mask3), g3, b3)


# ---------------------------------------------------------------------------
# Full Bottleneck forward (NCHW in / NCHW out, matching PyTorch).
# ---------------------------------------------------------------------------
def bottleneck_forward(x_nchw, params, ngroups, stride=1,
                       compute_dtype=jnp.bfloat16, spatial_tile=None):
    n, c_in, h, w = x_nchw.shape
    planes = params["w1"].shape[1]
    # downsample=None -> residual is x; requires stride==1, inplanes==4*planes.
    assert stride == 1 and c_in == 4 * planes, \
        "downsample=None requires stride==1 and inplanes == 4*planes"
    p = h * w
    x_cp = x_nchw.reshape(n, c_in, p)        # free reshape; stays NCHW layout

    w1 = params["w1"].astype(compute_dtype)                    # (Cin, planes)
    w2r = params["w2"].reshape(3, 3 * planes, planes).astype(compute_dtype)
    w3 = params["w3"].astype(compute_dtype)                    # (planes, 4*pl)

    # conv1 (1x1) + GN1 statistics (spatially tiled, streaming stats).
    y1, s1, t1 = conv1x1_gn_stats(x_cp, w1, params["gamma1"], params["beta1"],
                                  ngroups, compute_dtype, tile_p=spatial_tile)

    # GN1 pass B + conv2(3x3)+GN2+ReLU + conv3(1x1)+GN3 + residual + ReLU +
    # NCHW output, all fused per-sample (dropout p=0 is the identity).
    out = fused_conv_gn_residual(y1.reshape(n, h, w, planes), s1, t1, x_cp,
                                 w2r, w3, params["gamma2"], params["beta2"],
                                 params["gamma3"], params["beta3"], ngroups,
                                 compute_dtype)
    return out.reshape(n, c_in, h, w)


# ---------------------------------------------------------------------------
# Pure-JAX reference (mirrors the PyTorch module) for correctness checking.
# ---------------------------------------------------------------------------
def reference_forward(x, params, ngroups, stride=1):
    def conv(z, w_oihw, s, pad):
        return jax.lax.conv_general_dilated(
            z, w_oihw, window_strides=(s, s),
            padding=((pad, pad), (pad, pad)),
            dimension_numbers=("NCHW", "OIHW", "NCHW"),
            precision=jax.lax.Precision.HIGHEST)

    def gn(z, g, gamma, beta):
        n_, c_, h_, w_ = z.shape
        zg = z.reshape(n_, g, -1)
        mean = zg.mean(-1, keepdims=True)
        var = ((zg - mean) ** 2).mean(-1, keepdims=True)
        zn = ((zg - mean) / jnp.sqrt(var + EPS)).reshape(n_, c_, h_, w_)
        return zn * gamma[None, :, None, None] + beta[None, :, None, None]

    out = jax.nn.relu(gn(conv(x, params["w1_oihw"], 1, 0), ngroups,
                         params["gamma1"], params["beta1"]))
    out = jax.nn.relu(gn(conv(out, params["w2_oihw"], stride, 1), ngroups,
                         params["gamma2"], params["beta2"]))
    out = gn(conv(out, params["w3_oihw"], 1, 0), ngroups,
             params["gamma3"], params["beta3"])
    out = out + x
    return jax.nn.relu(out)


if __name__ == "__main__":
    # Shapes consistent with the module: inplanes = 4 * planes so that
    # downsample=None is valid (interior ResNet blocks).  128-channel input /
    # P=256 keeps every lane/sublane dimension tile-aligned while staying small.
    inplanes, planes, ngroups, stride = 128, 32, 4, 1
    n, h, w = 2, 16, 16

    keys = jax.random.split(jax.random.PRNGKey(0), 10)
    x = jax.random.normal(keys[0], (n, inplanes, h, w), jnp.float32)

    w1_oihw = 0.2 * jax.random.normal(keys[1], (planes, inplanes, 1, 1),
                                      jnp.float32)
    w2_oihw = 0.2 * jax.random.normal(keys[2], (planes, planes, 3, 3),
                                      jnp.float32)
    w3_oihw = 0.2 * jax.random.normal(keys[3], (planes * 4, planes, 1, 1),
                                      jnp.float32)

    # Non-trivial GN affine params so every stage affects the final output.
    # (The module's gn_init sets gamma3=0, which would make the comparison
    #  insensitive to conv1..conv3 — too weak a numerical test.)
    gamma1 = 0.5 + jax.random.uniform(keys[4], (planes,), jnp.float32)
    beta1 = 0.1 * jax.random.normal(keys[5], (planes,), jnp.float32)
    gamma2 = 0.5 + jax.random.uniform(keys[6], (planes,), jnp.float32)
    beta2 = 0.1 * jax.random.normal(keys[7], (planes,), jnp.float32)
    gamma3 = 0.5 + jax.random.uniform(keys[8], (planes * 4,), jnp.float32)
    beta3 = 0.1 * jax.random.normal(keys[9], (planes * 4,), jnp.float32)

    params = dict(
        w1_oihw=w1_oihw, w2_oihw=w2_oihw, w3_oihw=w3_oihw,
        # matmul-form weights for the kernels
        w1=jnp.transpose(w1_oihw[:, :, 0, 0], (1, 0)),        # (Cin, planes)
        w2=jnp.transpose(w2_oihw, (2, 3, 1, 0)),              # (3,3,Cin,Cout)
        w3=jnp.transpose(w3_oihw[:, :, 0, 0], (1, 0)),        # (planes, 4*pl)
        gamma1=gamma1, beta1=beta1,
        gamma2=gamma2, beta2=beta2,
        gamma3=gamma3, beta3=beta3,
    )

    ref = reference_forward(x, params, ngroups, stride)

    # spatial_tile=128 -> 2 P-tiles per sample: exercises the streamed GN-stats
    # accumulation (init / accumulate / finalize across the "arbitrary" axis).
    out_f32 = jax.block_until_ready(
        bottleneck_forward(x, params, ngroups, stride,
                           compute_dtype=jnp.float32, spatial_tile=128))
    assert out_f32.shape == ref.shape == (n, planes * 4, h, w)
    err = jnp.abs(out_f32 - ref)
    mx32, mean32 = float(jnp.max(err)), float(jnp.mean(err))
    assert mx32 < 8e-2 and mean32 < 2e-2, \
        f"f32 path error too large: max={mx32} mean={mean32}"

    # Production path: bf16 matmul operands / intermediates, f32 accumulation.
    out_bf16 = jax.block_until_ready(
        bottleneck_forward(x, params, ngroups, stride,
                           compute_dtype=jnp.bfloat16, spatial_tile=128))
    err = jnp.abs(out_bf16 - ref)
    mxbf, meanbf = float(jnp.max(err)), float(jnp.mean(err))
    assert mxbf < 3e-1 and meanbf < 6e-2, \
        f"bf16 path error too large: max={mxbf} mean={meanbf}"

    print("KERNEL_OK")
</pallas_src>

<mosaic_0001>
module attributes {stable_mosaic.version = 11 : i64} {
  func.func @_conv1x1_gn_stats_kernel(%arg0: i32, %arg1: i32, %arg2: memref<1x128x128xf32, #tpu.memory_space<vmem>>, %arg3: memref<128x32xf32, #tpu.memory_space<vmem>>, %arg4: memref<32x4xf32, #tpu.memory_space<vmem>>, %arg5: memref<4x32xf32, #tpu.memory_space<vmem>>, %arg6: memref<1x32xf32, #tpu.memory_space<vmem>>, %arg7: memref<1x32xf32, #tpu.memory_space<vmem>>, %arg8: memref<1x128x32xf32, #tpu.memory_space<vmem>>, %arg9: memref<1x1x32xf32, #tpu.memory_space<vmem>>, %arg10: memref<1x1x32xf32, #tpu.memory_space<vmem>>, %arg11: memref<1x32xf32, #tpu.memory_space<vmem>>, %arg12: memref<1x32xf32, #tpu.memory_space<vmem>>, %arg13: memref<1x32xf32, #tpu.memory_space<vmem>>) attributes {dimension_semantics = [#tpu.dimension_semantics<parallel>, #tpu.dimension_semantics<arbitrary>], iteration_bounds = array<i64: 2, 2>, scalar_prefetch = 0 : i64, scratch_operands = 3 : i64, tpu.core_type = #tpu.core_type<tc>, window_params = [{transform_indices = @transform_0, window_bounds = array<i64: 1, 128, 128>}, {pipeline_mode = #tpu.pipeline_mode<synchronous>, transform_indices = @transform_1, window_bounds = array<i64: 128, 32>}, {pipeline_mode = #tpu.pipeline_mode<synchronous>, transform_indices = @transform_2, window_bounds = array<i64: 32, 4>}, {pipeline_mode = #tpu.pipeline_mode<synchronous>, transform_indices = @transform_3, window_bounds = array<i64: 4, 32>}, {pipeline_mode = #tpu.pipeline_mode<synchronous>, transform_indices = @transform_4, window_bounds = array<i64: 1, 32>}, {pipeline_mode = #tpu.pipeline_mode<synchronous>, transform_indices = @transform_5, window_bounds = array<i64: 1, 32>}, {transform_indices = @transform_6, window_bounds = array<i64: 1, 128, 32>}, {transform_indices = @transform_7, window_bounds = array<i64: 1, 1, 32>}, {transform_indices = @transform_8, window_bounds = array<i64: 1, 1, 32>}]} {
    %c0 = arith.constant 0 : index
    %c0_0 = arith.constant 0 : index
    %c0_1 = arith.constant 0 : index
    %0 = vector.load %arg2[%c0, %c0_0, %c0_1] : memref<1x128x128xf32, #tpu.memory_space<vmem>>, vector<1x128x128xf32>
    %1 = vector.shape_cast %0 : vector<1x128x128xf32> to vector<128x128xf32>
    %2 = tpu.transpose %1, [1, 0] : vector<128x128xf32> -> vector<128x128xf32>
    %c0_2 = arith.constant 0 : index
    %c0_3 = arith.constant 0 : index
    %3 = vector.load %arg3[%c0_2, %c0_3] : memref<128x32xf32, #tpu.memory_space<vmem>>, vector<128x32xf32>
    %cst = arith.constant dense<0.000000e+00> : vector<128x32xf32>
    %4 = tpu.matmul %2, %3, %cst {dimension_numbers = #tpu.dot_dimension_numbers<[1], [0], [0], [1], [0, 0, 1, 1], [], []>} : vector<128x128xf32>, vector<128x32xf32>, vector<128x32xf32> -> vector<128x32xf32>
    %c0_i32 = arith.constant 0 : i32
    %5 = arith.cmpi eq, %arg1, %c0_i32 : i32
    %6 = arith.extui %5 : i1 to i32
    %c0_i32_4 = arith.constant 0 : i32
    %7 = arith.cmpi ne, %6, %c0_i32_4 : i32
    scf.if %7 {
      %cst_21 = arith.constant dense<0.000000e+00> : vector<32xf32>
      %28 = vector.multi_reduction <add>, %4, %cst_21 [0] : vector<128x32xf32> to vector<32xf32>
      %29 = vector.shape_cast %28 : vector<32xf32> to vector<1x32xf32>
      %cst_22 = arith.constant 7.812500e-03 : f32
      %30 = vector.broadcast %cst_22 : f32 to vector<1x32xf32>
      %31 = arith.mulf %29, %30 : vector<1x32xf32>
      %c0_23 = arith.constant 0 : index
      %c0_24 = arith.constant 0 : index
      %32 = vector.load %arg11[%c0_23, %c0_24] : memref<1x32xf32, #tpu.memory_space<vmem>>, vector<1x32xf32>
      tpu.vector_store %arg11[%c0_23, %c0_24], %31 {strides = array<i32>} : memref<1x32xf32, #tpu.memory_space<vmem>>, vector<1x32xf32>,
      %cst_25 = arith.constant 0.000000e+00 : f32
      %33 = vector.broadcast %cst_25 : f32 to vector<1x32xf32>
      %c0_26 = arith.constant 0 : index
      %c0_27 = arith.constant 0 : index
      %34 = vector.load %arg12[%c0_26, %c0_27] : memref<1x32xf32, #tpu.memory_space<vmem>>, vector<1x32xf32>
      tpu.vector_store %arg12[%c0_26, %c0_27], %33 {strides = array<i32>} : memref<1x32xf32, #tpu.memory_space<vmem>>, vector<1x32xf32>,
      %cst_28 = arith.constant 0.000000e+00 : f32
      %35 = vector.broadcast %cst_28 : f32 to vector<1x32xf32>
      %c0_29 = arith.constant 0 : index
      %c0_30 = arith.constant 0 : index
      %36 = vector.load %arg13[%c0_29, %c0_30] : memref<1x32xf32, #tpu.memory_space<vmem>>, vector<1x32xf32>
      tpu.vector_store %arg13[%c0_29, %c0_30], %35 {strides = array<i32>} : memref<1x32xf32, #tpu.memory_space<vmem>>, vector<1x32xf32>,
    } else {
    }
    %c0_5 = arith.constant 0 : index
    %c0_6 = arith.constant 0 : index
    %8 = vector.load %arg11[%c0_5, %c0_6] : memref<1x32xf32, #tpu.memory_space<vmem>>, vector<1x32xf32>
    %9 = vector.broadcast %8 : vector<1x32xf32> to vector<128x32xf32>
    %10 = arith.subf %4, %9 : vector<128x32xf32>
    %c0_7 = arith.constant 0 : index
    %c0_8 = arith.constant 0 : index
    %11 = vector.load %arg12[%c0_7, %c0_8] : memref<1x32xf32, #tpu.memory_space<vmem>>, vector<1x32xf32>
    %cst_9 = arith.constant dense<0.000000e+00> : vector<32xf32>
    %12 = vector.multi_reduction <add>, %10, %cst_9 [0] : vector<128x32xf32> to vector<32xf32>
    %13 = vector.shape_cast %12 : vector<32xf32> to vector<1x32xf32>
    %14 = arith.addf %11, %13 : vector<1x32xf32>
    %c0_10 = arith.constant 0 : index
    %c0_11 = arith.constant 0 : index
    %15 = vector.load %arg12[%c0_10, %c0_11] : memref<1x32xf32, #tpu.memory_space<vmem>>, vector<1x32xf32>
    tpu.vector_store %arg12[%c0_10, %c0_11], %14 {strides = array<i32>} : memref<1x32xf32, #tpu.memory_space<vmem>>, vector<1x32xf32>,
    %c0_12 = arith.constant 0 : index
    %c0_13 = arith.constant 0 : index
    %16 = vector.load %arg13[%c0_12, %c0_13] : memref<1x32xf32, #tpu.memory_space<vmem>>, vector<1x32xf32>
    %17 = arith.mulf %10, %10 : vector<128x32xf32>
    %cst_14 = arith.constant dense<0.000000e+00> : vector<32xf32>
    %18 = vector.multi_reduction <add>, %17, %cst_14 [0] : vector<128x32xf32> to vector<32xf32>
    %19 = vector.shape_cast %18 : vector<32xf32> to vector<1x32xf32>
    %20 = arith.addf %16, %19 : vector<1x32xf32>
    %c0_15 = arith.constant 0 : index
    %c0_16 = arith.constant 0 : index
    %21 = vector.load %arg13[%c0_15, %c0_16] : memref<1x32xf32, #tpu.memory_space<vmem>>, vector<1x32xf32>
    tpu.vector_store %arg13[%c0_15, %c0_16], %20 {strides = array<i32>} : memref<1x32xf32, #tpu.memory_space<vmem>>, vector<1x32xf32>,
    %c0_17 = arith.constant 0 : index
    %c0_18 = arith.constant 0 : index
    %c0_19 = arith.constant 0 : index
    %22 = vector.load %arg8[%c0_17, %c0_18, %c0_19] : memref<1x128x32xf32, #tpu.memory_space<vmem>>, vector<1x128x32xf32>
    %23 = vector.shape_cast %22 : vector<1x128x32xf32> to vector<128x32xf32>
    %24 = vector.shape_cast %4 : vector<128x32xf32> to vector<1x128x32xf32>
    tpu.vector_store %arg8[%c0_17, %c0_18, %c0_19], %24 {strides = array<i32>} : memref<1x128x32xf32, #tpu.memory_space<vmem>>, vector<1x128x32xf32>,
    %c1_i32 = arith.constant 1 : i32
    %25 = arith.cmpi eq, %arg1, %c1_i32 : i32
    %26 = arith.extui %25 : i1 to i32
    %c0_i32_20 = arith.constant 0 : i32
    %27 = arith.cmpi ne, %26, %c0_i32_20 : i32
    scf.if %27 {
      %c0_21 = arith.constant 0 : index
      %c0_22 = arith.constant 0 : index
      %28 = vector.load %arg11[%c0_21, %c0_22] : memref<1x32xf32, #tpu.memory_space<vmem>>, vector<1x32xf32>
      %c0_23 = arith.constant 0 : index
      %c0_24 = arith.constant 0 : index
      %29 = vector.load %arg12[%c0_23, %c0_24] : memref<1x32xf32, #tpu.memory_space<vmem>>, vector<1x32xf32>
      %c0_25 = arith.constant 0 : index
      %c0_26 = arith.constant 0 : index
      %30 = vector.load %arg13[%c0_25, %c0_26] : memref<1x32xf32, #tpu.memory_space<vmem>>, vector<1x32xf32>
      %c0_27 = arith.constant 0 : index
      %c0_28 = arith.constant 0 : index
      %31 = vector.load %arg4[%c0_27, %c0_28] : memref<32x4xf32, #tpu.memory_space<vmem>>, vector<32x4xf32>
      %c0_29 = arith.constant 0 : index
      %c0_30 = arith.constant 0 : index
      %32 = vector.load %arg5[%c0_29, %c0_30] : memref<4x32xf32, #tpu.memory_space<vmem>>, vector<4x32xf32>
      %cst_31 = arith.constant 2.560000e+02 : f32
      %33 = vector.broadcast %cst_31 : f32 to vector<1x32xf32>
      %34 = arith.mulf %33, %28 : vector<1x32xf32>
      %35 = arith.addf %29, %34 : vector<1x32xf32>
      %cst_32 = arith.constant dense<0.000000e+00> : vector<1x4xf32>
      %36 = tpu.matmul %35, %31, %cst_32 {dimension_numbers = #tpu.dot_dimension_numbers<[1], [0], [0], [1], [0, 0, 1, 1], [], []>} : vector<1x32xf32>, vector<32x4xf32>, vector<1x4xf32> -> vector<1x4xf32>
      %cst_33 = arith.constant 2.048000e+03 : f32
      %37 = vector.broadcast %cst_33 : f32 to vector<1x4xf32>
      %38 = arith.divf %36, %37 : vector<1x4xf32>
      %cst_34 = arith.constant dense<0.000000e+00> : vector<1x32xf32>
      %39 = tpu.matmul %38, %32, %cst_34 {dimension_numbers = #tpu.dot_dimension_numbers<[1], [0], [0], [1], [0, 0, 1, 1], [], []>} : vector<1x4xf32>, vector<4x32xf32>, vector<1x32xf32> -> vector<1x32xf32>
      %40 = arith.subf %28, %39 : vector<1x32xf32>
      %cst_35 = arith.constant 2.000000e+00 : f32
      %41 = vector.broadcast %cst_35 : f32 to vector<1x32xf32>
      %42 = arith.mulf %41, %40 : vector<1x32xf32>
      %43 = arith.mulf %42, %29 : vector<1x32xf32>
      %44 = arith.addf %30, %43 : vector<1x32xf32>
      %cst_36 = arith.constant 2.560000e+02 : f32
      %45 = vector.broadcast %cst_36 : f32 to vector<1x32xf32>
      %46 = arith.mulf %45, %40 : vector<1x32xf32>
      %47 = arith.mulf %46, %40 : vector<1x32xf32>
      %48 = arith.addf %44, %47 : vector<1x32xf32>
      %cst_37 = arith.constant dense<0.000000e+00> : vector<1x4xf32>
      %49 = tpu.matmul %48, %31, %cst_37 {dimension_numbers = #tpu.dot_dimension_numbers<[1], [0], [0], [1], [0, 0, 1, 1], [], []>} : vector<1x32xf32>, vector<32x4xf32>, vector<1x4xf32> -> vector<1x4xf32>
      %cst_38 = arith.constant 2.048000e+03 : f32
      %50 = vector.broadcast %cst_38 : f32 to vector<1x4xf32>
      %51 = arith.divf %49, %50 : vector<1x4xf32>
      %cst_39 = arith.constant 0.000000e+00 : f32
      %52 = vector.broadcast %cst_39 : f32 to vector<1x4xf32>
      %53 = arith.maximumf %51, %52 : vector<1x4xf32>
      %cst_40 = arith.constant 9.99999974E-6 : f32
      %54 = vector.broadcast %cst_40 : f32 to vector<1x4xf32>
      %55 = arith.addf %53, %54 : vector<1x4xf32>
      %56 = math.rsqrt %55 : vector<1x4xf32>
      %cst_41 = arith.constant dense<0.000000e+00> : vector<1x32xf32>
      %57 = tpu.matmul %56, %32, %cst_41 {dimension_numbers = #tpu.dot_dimension_numbers<[1], [0], [0], [1], [0, 0, 1, 1], [], []>} : vector<1x4xf32>, vector<4x32xf32>, vector<1x32xf32> -> vector<1x32xf32>
      %c0_42 = arith.constant 0 : index
      %c0_43 = arith.constant 0 : index
      %58 = vector.load %arg6[%c0_42, %c0_43] : memref<1x32xf32, #tpu.memory_space<vmem>>, vector<1x32xf32>
      %59 = arith.mulf %57, %58 : vector<1x32xf32>
      %c0_44 = arith.constant 0 : index
      %c0_45 = arith.constant 0 : index
      %c0_46 = arith.constant 0 : index
      %60 = vector.load %arg9[%c0_44, %c0_45, %c0_46] : memref<1x1x32xf32, #tpu.memory_space<vmem>>, vector<1x1x32xf32>
      %61 = vector.shape_cast %60 : vector<1x1x32xf32> to vector<1x32xf32>
      %62 = vector.shape_cast %59 : vector<1x32xf32> to vector<1x1x32xf32>
      tpu.vector_store %arg9[%c0_44, %c0_45, %c0_46], %62 {strides = array<i32>} : memref<1x1x32xf32, #tpu.memory_space<vmem>>, vector<1x1x32xf32>,
      %c0_47 = arith.constant 0 : index
      %c0_48 = arith.constant 0 : index
      %63 = vector.load %arg7[%c0_47, %c0_48] : memref<1x32xf32, #tpu.memory_space<vmem>>, vector<1x32xf32>
      %64 = arith.mulf %39, %59 : vector<1x32xf32>
      %65 = arith.subf %63, %64 : vector<1x32xf32>
      %c0_49 = arith.constant 0 : index
      %c0_50 = arith.constant 0 : index
      %c0_51 = arith.constant 0 : index
      %66 = vector.load %arg10[%c0_49, %c0_50, %c0_51] : memref<1x1x32xf32, #tpu.memory_space<vmem>>, vector<1x1x32xf32>
      %67 = vector.shape_cast %66 : vector<1x1x32xf32> to vector<1x32xf32>
      %68 = vector.shape_cast %65 : vector<1x32xf32> to vector<1x1x32xf32>
      tpu.vector_store %arg10[%c0_49, %c0_50, %c0_51], %68 {strides = array<i32>} : memref<1x1x32xf32, #tpu.memory_space<vmem>>, vector<1x1x32xf32>,
    } else {
    }
    return
  }
  func.func @transform_0(%arg0: i32, %arg1: i32) -> (i32, i32, i32) {
    %c0_i32 = arith.constant 0 : i32
    %c0_i32_0 = arith.constant 0 : i32
    return %arg0, %c0_i32, %arg1 : i32, i32, i32
  }
  func.func @transform_1(%arg0: i32, %arg1: i32) -> (i32, i32) {
    %c0_i32 = arith.constant 0 : i32
    %c0_i32_0 = arith.constant 0 : i32
    %c0_i32_1 = arith.constant 0 : i32
    return %c0_i32, %c0_i32_0 : i32, i32
  }
  func.func @transform_2(%arg0: i32, %arg1: i32) -> (i32, i32) {
    %c0_i32 = arith.constant 0 : i32
    %c0_i32_0 = arith.constant 0 : i32
    %c0_i32_1 = arith.constant 0 : i32
    return %c0_i32, %c0_i32_0 : i32, i32
  }
  func.func @transform_3(%arg0: i32, %arg1: i32) -> (i32, i32) {
    %c0_i32 = arith.constant 0 : i32
    %c0_i32_0 = arith.constant 0 : i32
    %c0_i32_1 = arith.constant 0 : i32
    return %c0_i32, %c0_i32_0 : i32, i32
  }
  func.func @transform_4(%arg0: i32, %arg1: i32) -> (i32, i32) {
    %c0_i32 = arith.constant 0 : i32
    %c0_i32_0 = arith.constant 0 : i32
    %c0_i32_1 = arith.constant 0 : i32
    return %c0_i32, %c0_i32_0 : i32, i32
  }
  func.func @transform_5(%arg0: i32, %arg1: i32) -> (i32, i32) {
    %c0_i32 = arith.constant 0 : i32
    %c0_i32_0 = arith.constant 0 : i32
    %c0_i32_1 = arith.constant 0 : i32
    return %c0_i32, %c0_i32_0 : i32, i32
  }
  func.func @transform_6(%arg0: i32, %arg1: i32) -> (i32, i32, i32) {
    %c0_i32 = arith.constant 0 : i32
    %c0_i32_0 = arith.constant 0 : i32
    return %arg0, %arg1, %c0_i32 : i32, i32, i32
  }
  func.func @transform_7(%arg0: i32, %arg1: i32) -> (i32, i32, i32) {
    %c0_i32 = arith.constant 0 : i32
    %c0_i32_0 = arith.constant 0 : i32
    %c0_i32_1 = arith.constant 0 : i32
    return %arg0, %c0_i32, %c0_i32_0 : i32, i32, i32
  }
  func.func @transform_8(%arg0: i32, %arg1: i32) -> (i32, i32, i32) {
    %c0_i32 = arith.constant 0 : i32
    %c0_i32_0 = arith.constant 0 : i32
    %c0_i32_1 = arith.constant 0 : i32
    return %arg0, %c0_i32, %c0_i32_0 : i32, i32, i32
  }
}

</mosaic_0001>

<bundles_post_ra>
// kernel: tpu_custom_call.1
= control target key start
LH: loop header
LB: loop body
LE: loop exit
PB: predicated region body
PF: predicated region fallthrough
CT: control target
= control target key end

     0   :  { %s1919_s0 = inlined_call_operand.hbm [shape: f32[2,128,256], index: 0, kind: input, shape index: {}]   ;;  %s1920_s1 = inlined_call_operand.vmem [shape: f32[128,32], index: 1, kind: input, shape index: {}]   ;;  %s1921_s2 = inlined_call_operand.vmem [shape: f32[32,4], index: 2, kind: input, shape index: {}]   ;;  %s1922_s3 = inlined_call_operand.vmem [shape: f32[4,32], index: 3, kind: input, shape index: {}]   ;;  %s1923_s4 = inlined_call_operand.vmem [shape: f32[1,32], index: 4, kind: input, shape index: {}]   ;;  %s1924_s5 = inlined_call_operand.vmem [shape: f32[1,32], index: 5, kind: input, shape index: {}]   ;;  %s1925_s6 = inlined_call_operand.vmem [shape: f32[2,256,32], index: 6, kind: output, shape index: {0}]   ;;  %s1926_s7 = inlined_call_operand.hbm [shape: f32[2,1,32], index: 7, kind: output, shape index: {1}]   ;;  %s1927_s8 = inlined_call_operand.hbm [shape: f32[2,1,32], index: 8, kind: output, shape index: {2}]  }
   0x1   :  { %1937 = sst [smem:[#allocation22_spill]] %s1924_s5 }
   0x2   :  { %1938 = sst [smem:[#allocation23_spill]] %s1926_s7 }
   0x3   :  { %1939 = sst [smem:[#allocation24_spill]] %s1927_s8 }
   0x4   :  { %14 = vsyncpa [#allocation6], 0 }
   0x5   :  { %16 = vsyncpa [#allocation6 + $0x1], 0 }
   0x6   :  { %17 = vsyncpa [#allocation7], 0 }
   0x7   :  { %19 = vsyncpa [#allocation7 + $0x1], 0 }
   0x8   :  { %20 = vsyncpa [#allocation10], 0 }
   0x9   :  { %22 = vsyncpa [#allocation10 + $0x1], 0  ;;  %s1439_s27 = smov 0   ;;  %s1441_s28 = smov 0  }
   0xa   :  { %s1443_s29 = smov 0   ;;  %s1445_s30 = smov 0  }
   0xb   :  { %s1447_s9 = smov 0   ;;  %s1449_s10 = smov 0  }
   0xc   :  { %s1451_s11 = smov 0   ;;  %s1453_s12 = smov 0  }
   0xd   :  { %s1455_s13 = smov 0   ;;  %s1457_s14 = smov 0  }
   0xe   :  { %s1459_s15 = smov 0  }
   0xf LB: > { %1940 = sst [smem:[#allocation14_spill]] %s1355_s29  ;;  %s1016_s16 = sadd.s32 4294967295, %s1387_s15   ;;  %s1387_s15 = sphi %s1459_s15, %s28_s15   ;;  %s1383_s14 = sphi %s1457_s14, %s1970_s14   ;;  %s1379_s13 = sphi %s1455_s13, %s1969_s13   ;;  %s1375_s12 = sphi %s1453_s12, %s1968_s12   ;;  %s1371_s11 = sphi %s1451_s11, %s1967_s11   ;;  %s1367_s10 = sphi %s1449_s10, %s1960_s10   ;;  %s1363_s9 = sphi %s1447_s9, %s1966_s9   ;;  %s1359_s30 = sphi %s1445_s30, %s1965_s30   ;;  %s1355_s29 = sphi %s1443_s29, %s1958_s29   ;;  %s1351_s28 = sphi %s1441_s28, %s1964_s28   ;;  %s1347_s27 = sphi %s1439_s27, %s1963_s27  }
  0x10   : > { %1941 = sst [smem:[#allocation15_spill]] %s1367_s10  ;;  %s1017_s17 = sadd.s32 4294967294, %s1387_s15  }
  0x11   : > { %s37_s18 = sadd.s32 1, %s1379_s13  ;;  %s40_s19 = sadd.s32 1, %s1383_s14 }
  0x12   : > { %p38_p0 = scmp.ge.s32.totalorder %s37_s18, 2  ;;  %s49_s20 = sadd.s32 1, %s1367_s10 }
  0x13   : > { %p56_p1 = scmp.ne.s32.totalorder %s1367_s10, %s1363_s9  ;;  %p57_p2 = scmp.eq.s32.totalorder %s1387_s15, 0 }
  0x14   : > { %s1972_s18 = smov (%p38_p0, %s37_s18), 0  ;;  %s1974_s19 = smov (!%p38_p0, %s40_s19), %s1383_s14 }
  0x15   : > { %1942 = sst [smem:[#allocation16_spill]] %s1972_s18  ;;  %s45_s21 = ssub.s32 %s1379_s13, %s1972_s18 }
  0x16   : > { %p1505_p3 = por %p57_p2, %p56_p1  ;;  %p42_p4 = scmp.ge.s32.totalorder %s1974_s19, 2 }
  0x17   : > { %p62_p5 = scmp.ne.s32.totalorder %s1363_s9, %s1359_s30  ;;  %p63_p6 = scmp.eq.s32.totalorder %s1016_s16, 0 }
  0x18   : > { %s208_s23 = sadd.s32 1, %s1355_s29  ;;  %s1976_s19 = smov (%p42_p4, %s1974_s19), 0 }
  0x19   : > { %1944 = sst [smem:[#allocation17_spill]] %s1976_s19  ;;  %p1513_p7 = por %p63_p6, %p62_p5 }
  0x1a   : > { %p218_p8 = scmp.ne.s32.totalorder %s1355_s29, %s1351_s28  ;;  %s44_s25 = ssub.s32 %s1383_s14, %s1976_s19 }
  0x1b   : > { %p219_p9 = scmp.eq.s32.totalorder %s1016_s16, 3  ;;  %s46_s26 = sor.u32 %s45_s21, %s44_s25 }
  0x1c   : > { %p206_p10 = scmp.eq.s32.totalorder %s44_s25, 0  ;;  %p47_p11 = scmp.eq.s32.totalorder %s46_s26, 0 }
  0x1d   : > { %p1521_p12 = por %p219_p9, %p218_p8  ;;  %p224_p13 = scmp.ne.s32.totalorder %s1351_s28, %s1347_s27 }
  0x1e   : > { %s1526_s18 = scalar_select %p206_p10, %s1355_s29, %s208_s23  }
  0x1f   : > { %s1946_s30 = scalar_select %p1521_p12, 1, 0 }
  0x20   : > { %1948 = sst [smem:[#allocation19_spill]] %s1526_s18  ;;  %p225_p0 = scmp.eq.s32.totalorder %s1017_s17, 3 }
  0x21   : > { %1947 = sst [smem:[#allocation18_spill]] %s1946_s30  ;;  %p1103_p1 = scmp.lt.s32.totalorder %s1387_s15, 4 }
  0x22   : > { %s1529_s8 = scalar_select %p47_p11, %s1367_s10, %s49_s20  }
  0x23   : > { %p1534_p2 = por %p225_p0, %p224_p13  ;;  %s286_s16 = sand.u32 1, %s1367_s10  }
  0x24   : > { %1949 = sst [smem:[#allocation20_spill]] %s1529_s8  ;;  %s1020_s21 = sshll.u32 %s286_s16, 7 }
  0x25   : > { %s1950_s7 = scalar_select %p1534_p2, 1, 0 }
  0x26   : > { %s1021_s25 = sshll.u32 %s1383_s14, 5  ;;  %s290_s19 = scalar_lea.vmem [#allocation5], %s1020_s21 }
  0x27   : > { %1951 = sst [smem:[#allocation21_spill]] %s1950_s7  ;;  %s294_s26 = sadd.s32 %s1379_s13, %s1021_s25 }
  0x28   : > { %s299_s30 = sshll.u32 %s290_s19, 4  ;;  %s1022_s5 = sshll.u32 %s294_s26, 3  ;;  %s300_s30 = int_to_ptr.vmem [resolvable:$true] %s299_s30 }
  0x29   : > { %s296_s8 = scalar_lea.hbm %s1919_s0, %s1022_s5  ;;  %p1093_p4 = pnand %p1103_p1, %p1505_p3 }
  0x2a   : > { %s297_s17 = sshll.u32 %s296_s8, 4  ;;  %s287_s18 = scalar_lea.sflag [#allocation6], %s286_s16  ;;  %s298_s17 = int_to_ptr.hbm [resolvable:$true] %s297_s17 }
  0x2b   : > { %s1389_s29 = smov 256   ;;  %s1390_s10 = smov 128  }
  0x2c   : > { %s1391_s7 = smov 8   ;;  %p1023_p5 = scmp.ge.s32.totalorder %s1387_s15, 1 }
  0x2d   : > { %1095 = dma.hbm_to_vmem [thread:$0]  (!%p1093_p4), %s298_s17, 2048, %s300_s30, %s287_s18, %s1389_s29, %s1390_s10, %s1391_s7  }
  0x2e   : > { %p307_p6 = scmp.lt.s32.totalorder %s1387_s15, 5 }
  0x30   : > { %p308_p8 = pnand %p1023_p5, %p307_p6 }
  0x31   : > { %s313_s19 = sand.u32 (!%p308_p8), 1, %s1363_s9  }
  0x32   : > { %311 = sbr.rel (%p308_p8) target bundleno = 1186 (0x4a2), region = 44  ;;  %s1024_s21 = sshll.u32 (!%p308_p8), %s313_s19, 7 }
  0x33   : > { %s314_s25 = scalar_lea.sflag (!%p308_p8), [#allocation6], %s313_s19  ;;  %s1549_s26 = scalar_lea.vmem (!%p308_p8), [#allocation5], %s1024_s21 }
  0x37   : > { %1334 = dma.done.wait (%p1513_p7), %s314_s25, 2048  }
  0x38   : > { %1336 = vsyncadd (%p1513_p7), %s314_s25, 4294965248  ;;  %s1556_s5 = sand.u32 1, %s1351_s28   ;;  %s1025_s7 = sshll.u32 %s1371_s11, 4  ;;  %v373_v0 = vld [vmem:[%s1549_s26] sm:$0xff]  ;;  %v374_v1 = vld [vmem:[%s1549_s26 + $0x8] sm:$0xff] }
  0x39   : > { %p364_p3 = scmp.lt.s32.totalorder %s1375_s12, 1  ;;  %p366_p9 = scmp.lt.s32.totalorder %s1025_s7, 31  ;;  %389 = vxpose.xlu0.b32.start [1/16] %v373_v0, 128  ;;  %v375_v2 = vld [vmem:[%s1549_s26 + $0x10] sm:$0xff]  ;;  %v376_v3 = vld [vmem:[%s1549_s26 + $0x18] sm:$0xff]  ;;  %v377_v4 = vld [vmem:[%s1549_s26 + $0x20] sm:$0xff] }
  0x3a   : > { %v378_v5 = vld [vmem:[%s1549_s26 + $0x28] sm:$0xff]  ;;  %v379_v6 = vld [vmem:[%s1549_s26 + $0x30] sm:$0xff]  ;;  %v380_v7 = vld [vmem:[%s1549_s26 + $0x38] sm:$0xff]  ;;  %s362_s19 = scalar_lea.vmem [#allocation9], %s1556_s5  ;;  %p1028_p7 = scmp.ne.s32.totalorder %s1371_s11, 0 }
  0x3b   : > { %s365_s8 = scalar_select %p364_p3, %s1375_s12, 1  ;;  %v381_v8 = vld [vmem:[%s1549_s26 + $0x40] sm:$0xff]  ;;  %v382_v9 = vld [vmem:[%s1549_s26 + $0x48] sm:$0xff]  ;;  %v383_v10 = vld [vmem:[%s1549_s26 + $0x50] sm:$0xff] }
  0x3c   : > { %s1978_s7 = smov (!%p366_p9, %s1025_s7), 31  ;;  %v384_v11 = vld [vmem:[%s1549_s26 + $0x58] sm:$0xff]  ;;  %v435_v13 = vld [vmem:[%s1920_s1 + $0x70] sm:$0xff]  ;;  %v434_v14 = vld [vmem:[%s1920_s1 + $0x68] sm:$0xff] }
  0x3d   : > { %s1026_s29 = sshll.u32 %s365_s8, 5  ;;  %v436_v12 = vld [vmem:[%s1920_s1 + $0x78] sm:$0xff]  ;;  %v433_v15 = vld [vmem:[%s1920_s1 + $0x60] sm:$0xff]  ;;  %v431_v18 = vld [vmem:[%s1920_s1 + $0x50] sm:$0xff] }
  0x3e   : > { %s369_s10 = sadd.s32 %s1026_s29, %s1978_s7  ;;  %437 = vmatpush.msra.mxu0 %v436_v12  ;;  %1038 = vmatpush.msra.mxu1 %v436_v12  ;;  %v385_v16 = vld [vmem:[%s1549_s26 + $0x60] sm:$0xff]  ;;  %v432_v17 = vld [vmem:[%s1920_s1 + $0x58] sm:$0xff]  ;;  %v386_v21 = vld [vmem:[%s1549_s26 + $0x68] sm:$0xff] }
  0x3f   : > { %s1027_s18 = sshll.u32 %s369_s10, 3  ;;  %1039 = vmatpush.msra.mxu2 %v436_v12  ;;  %1040 = vmatpush.msra.mxu3 %v436_v12  ;;  %v430_v19 = vld [vmem:[%s1920_s1 + $0x48] sm:$0xff]  ;;  %v429_v20 = vld [vmem:[%s1920_s1 + $0x40] sm:$0xff]  ;;  %v428_v22 = vld [vmem:[%s1920_s1 + $0x38] sm:$0xff] }
  0x40   : > { %s1565_s30 = scalar_lea.vmem %s1925_s6, %s1027_s18  ;;  %438 = vmatpush.msra.mxu0 %v435_v13  ;;  %1041 = vmatpush.msra.mxu1 %v435_v13  ;;  %v427_v23 = vld [vmem:[%s1920_s1 + $0x30] sm:$0xff]  ;;  %v426_v24 = vld [vmem:[%s1920_s1 + $0x28] sm:$0xff]  ;;  %v425_v25 = vld [vmem:[%s1920_s1 + $0x20] sm:$0xff] }
  0x41   : > { %390 = vxpose.xlu0.b32.cont [2/16] %v374_v1, 128  ;;  %1042 = vmatpush.msra.mxu2 %v435_v13  ;;  %v387_v26 = vld [vmem:[%s1549_s26 + $0x70] sm:$0xff]  ;;  %v422_v29 = vld [vmem:[%s1920_s1 + $0x8] sm:$0xff]  ;;  %v388_v30 = vld [vmem:[%s1549_s26 + $0x78] sm:$0xff]  ;;  %s356_s26 = scalar_lea.vmem [#allocation8], %s1556_s5 }
  0x42   : > { %1043 = vmatpush.msra.mxu3 %v435_v13  ;;  %439 = vmatpush.msra.mxu0 %v434_v14  ;;  %v424_v27 = vld [vmem:[%s1920_s1 + $0x18] sm:$0xff]  ;;  %v423_v28 = vld [vmem:[%s1920_s1 + $0x10] sm:$0xff]  ;;  %v421_v31 = vld [vmem:[%s1920_s1] sm:$0xff] }
  0x43   : > { %1044 = vmatpush.msra.mxu1 %v434_v14  ;;  %1045 = vmatpush.msra.mxu2 %v434_v14 }
  0x44   : > { %1046 = vmatpush.msra.mxu3 %v434_v14  ;;  %440 = vmatpush.msra.mxu0 %v433_v15 }
  0x45   : > { %1047 = vmatpush.msra.mxu1 %v433_v15  ;;  %1048 = vmatpush.msra.mxu2 %v433_v15 }
  0x46   : > { %441 = vmatpush.msra.mxu0 %v432_v17  ;;  %1049 = vmatpush.msra.mxu3 %v433_v15 }
  0x47   : > { %1050 = vmatpush.msra.mxu1 %v432_v17  ;;  %1051 = vmatpush.msra.mxu2 %v432_v17 }
  0x48   : > { %442 = vmatpush.msra.mxu0 %v431_v18  ;;  %1052 = vmatpush.msra.mxu3 %v432_v17 }
  0x49   : > { %391 = vxpose.xlu0.b32.cont [3/16] %v375_v2, 128  ;;  %1053 = vmatpush.msra.mxu1 %v431_v18 }
  0x4a   : > { %1054 = vmatpush.msra.mxu2 %v431_v18  ;;  %443 = vmatpush.msra.mxu0 %v430_v19 }
  0x4b   : > { %1056 = vmatpush.msra.mxu1 %v430_v19  ;;  %1055 = vmatpush.msra.mxu3 %v431_v18 }
  0x4c   : > { %1057 = vmatpush.msra.mxu2 %v430_v19  ;;  %444 = vmatpush.msra.mxu0 %v429_v20 }
  0x4d   : > { %1059 = vmatpush.msra.mxu1 %v429_v20  ;;  %1058 = vmatpush.msra.mxu3 %v430_v19 }
  0x4e   : > { %1060 = vmatpush.msra.mxu2 %v429_v20  ;;  %445 = vmatpush.msra.mxu0 %v428_v22 }
  0x4f   : > { %1062 = vmatpush.msra.mxu1 %v428_v22  ;;  %1061 = vmatpush.msra.mxu3 %v429_v20 }
  0x50   : > { %1063 = vmatpush.msra.mxu2 %v428_v22  ;;  %446 = vmatpush.msra.mxu0 %v427_v23 }
  0x51   : > { %392 = vxpose.xlu0.b32.cont [4/16] %v376_v3, 128  ;;  %1065 = vmatpush.msra.mxu1 %v427_v23 }
  0x52   : > { %1066 = vmatpush.msra.mxu2 %v427_v23  ;;  %447 = vmatpush.msra.mxu0 %v426_v24 }
  0x53   : > { %1068 = vmatpush.msra.mxu1 %v426_v24  ;;  %1064 = vmatpush.msra.mxu3 %v428_v22 }
  0x54   : > { %1069 = vmatpush.msra.mxu2 %v426_v24  ;;  %448 = vmatpush.msra.mxu0 %v425_v25 }
  0x55   : > { %1071 = vmatpush.msra.mxu1 %v425_v25  ;;  %1067 = vmatpush.msra.mxu3 %v427_v23 }
  0x56   : > { %1072 = vmatpush.msra.mxu2 %v425_v25  ;;  %449 = vmatpush.msra.mxu0 %v424_v27 }
  0x57   : > { %1074 = vmatpush.msra.mxu1 %v424_v27  ;;  %1070 = vmatpush.msra.mxu3 %v426_v24 }
  0x58   : > { %1075 = vmatpush.msra.mxu2 %v424_v27  ;;  %450 = vmatpush.msra.mxu0 %v423_v28 }
  0x59   : > { %393 = vxpose.xlu0.b32.cont [5/16] %v377_v4, 128  ;;  %1077 = vmatpush.msra.mxu1 %v423_v28 }
  0x5a   : > { %1078 = vmatpush.msra.mxu2 %v423_v28  ;;  %451 = vmatpush.msra.mxu0 %v422_v29 }
  0x5b   : > { %1080 = vmatpush.msra.mxu1 %v422_v29  ;;  %1073 = vmatpush.msra.mxu3 %v425_v25 }
  0x5c   : > { %1081 = vmatpush.msra.mxu2 %v422_v29  ;;  %452 = vmatpush.msra.mxu0 %v421_v31 }
  0x5d   : > { %1076 = vmatpush.msra.mxu3 %v424_v27  ;;  %1083 = vmatpush.msra.mxu1 %v421_v31 }
  0x5e   : > { %1084 = vmatpush.msra.mxu2 %v421_v31 }
  0x5f   : > { %1079 = vmatpush.msra.mxu3 %v423_v28 }
  0x61   : > { %394 = vxpose.xlu0.b32.cont [6/16] %v378_v5, 128  ;;  %1082 = vmatpush.msra.mxu3 %v422_v29 }
  0x63   : > { %1085 = vmatpush.msra.mxu3 %v421_v31 }
  0x69   : > { %395 = vxpose.xlu0.b32.cont [7/16] %v379_v6, 128 }
  0x71   : > { %396 = vxpose.xlu0.b32.cont [8/16] %v380_v7, 128 }
  0x79   : > { %397 = vxpose.xlu0.b32.cont [9/16] %v381_v8, 128 }
  0x81   : > { %398 = vxpose.xlu0.b32.cont [10/16] %v382_v9, 128 }
  0x89   : > { %399 = vxpose.xlu0.b32.cont [11/16] %v383_v10, 128 }
  0x91   : > { %400 = vxpose.xlu0.b32.cont [12/16] %v384_v11, 128 }
  0x99   : > { %401 = vxpose.xlu0.b32.cont [13/16] %v385_v16, 128 }
  0xa1   : > { %402 = vxpose.xlu0.b32.cont [14/16] %v386_v21, 128 }
  0xa9   : > { %403 = vxpose.xlu0.b32.cont [15/16] %v387_v26, 128 }
  0xb1   : > { %404 = vxpose.xlu0.b32.end [16/16] %v388_v30, 128 }
  0xdd   : > { %v405_v32 = vpop.trf.xlu0 }
  0xde   : > { %453 = vmatmul.f32.vlgmr.msra.gmra.mxu0 %v405_v32 }
  0xe5   : > { %v406_v33 = vpop.trf.xlu0 }
  0xe6   : > { %456 = vmatmul.f32.gmra.mxu0 %v406_v33 }
  0xed   : > { %v407_v34 = vpop.trf.xlu0 }
  0xee   : > { %459 = vmatmul.f32.gmra.mxu0 %v407_v34 }
  0xf5   : > { %v408_v35 = vpop.trf.xlu0 }
  0xf6   : > { %462 = vmatmul.f32.gmra.mxu0 %v408_v35 }
  0xfd   : > { %v409_v36 = vpop.trf.xlu0 }
  0xfe   : > { %465 = vmatmul.f32.vlgmr.msra.gmra.mxu1 %v409_v36 }
 0x105   : > { %v410_v37 = vpop.trf.xlu0 }
 0x106   : > { %468 = vmatmul.f32.gmra.mxu1 %v410_v37 }
 0x10d   : > { %v411_v38 = vpop.trf.xlu0 }
 0x10e   : > { %471 = vmatmul.f32.gmra.mxu1 %v411_v38 }
 0x115   : > { %v412_v39 = vpop.trf.xlu0 }
 0x116   : > { %474 = vmatmul.f32.gmra.mxu1 %v412_v39 }
 0x11d   : > { %v413_v40 = vpop.trf.xlu0 }
 0x11e   : > { %477 = vmatmul.f32.vlgmr.msra.gmra.mxu2 %v413_v40 }
 0x125   : > { %v414_v41 = vpop.trf.xlu0 }
 0x126   : > { %480 = vmatmul.f32.gmra.mxu2 %v414_v41 }
 0x12d   : > { %v415_v42 = vpop.trf.xlu0 }
 0x12e   : > { %483 = vmatmul.f32.gmra.mxu2 %v415_v42 }
 0x135   : > { %v416_v43 = vpop.trf.xlu0 }
 0x136   : > { %486 = vmatmul.f32.gmra.mxu2 %v416_v43 }
 0x13d   : > { %v417_v44 = vpop.trf.xlu0 }
 0x13e   : > { %489 = vmatmul.f32.vlgmr.msra.gmra.mxu3 %v417_v44 }
 0x145   : > { %v418_v45 = vpop.trf.xlu0 }
 0x146   : > { %492 = vmatmul.f32.gmra.mxu3 %v418_v45 }
 0x14d   : > { %v419_v46 = vpop.trf.xlu0 }
 0x14e   : > { %495 = vmatmul.f32.gmra.mxu3 %v419_v46 }
 0x155   : > { %v420_v47 = vpop.trf.xlu0 }
 0x156   : > { %498 = vmatmul.f32.gmra.mxu3 %v420_v47 }
 0x15b   : > { %v1630_v48 = vpop.f32.mrf.mxu0 }
 0x163   : > { %v1632_v49 = vpop.f32.mrf.mxu0 }
 0x16b   : > { %v1634_v50 = vpop.f32.mrf.mxu0 }
 0x173   : > { %v1636_v51 = vpop.f32.mrf.mxu0 }
 0x17b   : > { %v1638_v52 = vpop.f32.mrf.mxu1 }
 0x183   : > { %v1640_v53 = vpop.f32.mrf.mxu1 }
 0x18b   : > { %v1642_v54 = vpop.f32.mrf.mxu1 }
 0x193   : > { %v1644_v55 = vpop.f32.mrf.mxu1 }
 0x1a1   : > { %v1646_v56 = vpop.f32.mrf.mxu2 }
 0x1a9   : > { %v1648_v57 = vpop.f32.mrf.mxu2 }
 0x1b1   : > { %v1650_v58 = vpop.f32.mrf.mxu2 }
 0x1b9   : > { %v1652_v59 = vpop.f32.mrf.mxu2 }
 0x1c1   : > { %v1654_v60 = vpop.f32.mrf.mxu3 }
 0x1c9   : > { %v1656_v61 = vpop.f32.mrf.mxu3 }
 0x1d1   : > { %v1658_v62 = vpop.f32.mrf.mxu3 }
 0x1d5   : > { %505 = sbr.rel (%p1028_p7) target bundleno = 521 (0x209), region = 52 }
 0x1d9   : > { %v1660_v63 = vpop.f32.mrf.mxu3 }
 0x1da   : > { %vm506_vm0 = vcmask 261120   ;;  %vm545_vm1 = vcmask 253952   ;;  %v1392_v16 = vmov 0.0  }
 0x1db   : > { %v507_v0 = vsel %vm506_vm0, %v1630_v48, 0.0  ;;  %v508_v1 = vsel %vm506_vm0, %v1632_v49, 0.0  ;;  %v510_v2 = vsel %vm506_vm0, %v1634_v50, 0.0  ;;  %v512_v4 = vsel %vm506_vm0, %v1636_v51, 0.0  ;;  %547 = vst.msk [vmem:[#allocation3] sm:$0x1] %vm545_vm1, %v1392_v16 }
 0x1dc   : > { %v509_v3 = vadd.f32 %v508_v1, %v507_v0  ;;  %v514_v6 = vsel %vm506_vm0, %v1638_v52, 0.0  ;;  %v516_v8 = vsel %vm506_vm0, %v1640_v53, 0.0  ;;  %v518_v10 = vsel %vm506_vm0, %v1642_v54, 0.0  ;;  %548 = vst.msk [vmem:[#allocation4] sm:$0x1] %vm545_vm1, %v1392_v16 }
 0x1dd   : > { %v520_v12 = vsel %vm506_vm0, %v1644_v55, 0.0  ;;  %v522_v14 = vsel %vm506_vm0, %v1646_v56, 0.0  ;;  %v524_v17 = vsel %vm506_vm0, %v1648_v57, 0.0  ;;  %v526_v19 = vsel %vm506_vm0, %v1650_v58, 0.0 }
 0x1de   : > { %v511_v5 = vadd.f32 %v510_v2, %v509_v3  ;;  %v528_v21 = vsel %vm506_vm0, %v1652_v59, 0.0  ;;  %v530_v23 = vsel %vm506_vm0, %v1654_v60, 0.0  ;;  %v532_v25 = vsel %vm506_vm0, %v1656_v61, 0.0 }
 0x1df   : > { %v534_v27 = vsel %vm506_vm0, %v1658_v62, 0.0  ;;  %v536_v29 = vsel %vm506_vm0, %v1660_v63, 0.0 }
 0x1e0   : > { %v513_v7 = vadd.f32 %v512_v4, %v511_v5 }
 0x1e2   : > { %v515_v9 = vadd.f32 %v514_v6, %v513_v7 }
 0x1e4   : > { %v517_v11 = vadd.f32 %v516_v8, %v515_v9 }
 0x1e6   : > { %v519_v13 = vadd.f32 %v518_v10, %v517_v11 }
 0x1e8   : > { %v521_v15 = vadd.f32 %v520_v12, %v519_v13 }
 0x1ea   : > { %v523_v18 = vadd.f32 %v522_v14, %v521_v15 }
 0x1ec   : > { %v525_v20 = vadd.f32 %v524_v17, %v523_v18 }
 0x1ee   : > { %v527_v22 = vadd.f32 %v526_v19, %v525_v20 }
 0x1f0   : > { %v529_v24 = vadd.f32 %v528_v21, %v527_v22 }
 0x1f2   : > { %v531_v26 = vadd.f32 %v530_v23, %v529_v24 }
 0x1f4   : > { %v533_v28 = vadd.f32 %v532_v25, %v531_v26 }
 0x1f6   : > { %v535_v30 = vadd.f32 %v534_v27, %v533_v28 }
 0x1f8   : > { %v537_v31 = vadd.f32 %v536_v29, %v535_v30 }
 0x1fa   : > { %v538_v32 = vrot.slane %v537_v31, 4 }
 0x1fc   : > { %v539_v33 = vadd.f32 %v538_v32, %v537_v31 }
 0x1fe   : > { %v540_v34 = vrot.slane %v539_v33, 2 }
 0x200   : > { %v541_v35 = vadd.f32 %v540_v34, %v539_v33 }
 0x202   : > { %v542_v36 = vrot.slane %v541_v35, 1 }
 0x204   : > { %v543_v37 = vadd.f32 %v542_v36, %v541_v35 }
 0x206   : > { %v544_v38 = vmul.f32 0.0078125, %v543_v37 }
 0x208   : > { %546 = vst.msk [vmem:[#allocation2] sm:$0x1] %vm545_vm1, %v544_v38 }
 0x209 PF: > { %vm570_vm2 = vcmask 261120   ;;  %vm609_vm3 = vcmask 253952   ;;  %p1029_p10 = scmp.ne.s32.totalorder %s1371_s11, 1 }
 0x20a   : > { %667 = vst.msk [vmem:[%s1565_s30] sm:$0xff] %vm570_vm2, %v1630_v48  ;;  %s1952_s17 = sld [smem:[#allocation22_spill]] (!%p1029_p10) }
 0x20b   : > { %668 = vst.msk [vmem:[%s1565_s30 + $0x8] sm:$0xff] %vm570_vm2, %v1632_v49 }
 0x20c   : > { %669 = vst.msk [vmem:[%s1565_s30 + $0x10] sm:$0xff] %vm570_vm2, %v1634_v50 }
 0x20d   : > { %670 = vst.msk [vmem:[%s1565_s30 + $0x18] sm:$0xff] %vm570_vm2, %v1636_v51 }
 0x20e   : > { %671 = vst.msk [vmem:[%s1565_s30 + $0x20] sm:$0xff] %vm570_vm2, %v1638_v52 }
 0x20f   : > { %v1700_v39 = vld [vmem:[#allocation2] ss:$0 sm:$0xff]  ;;  %672 = vst.msk [vmem:[%s1565_s30 + $0x28] sm:$0xff] %vm570_vm2, %v1640_v53 }
 0x210   : > { %v553_v40 = vsub.f32 %v1630_v48, %v1700_v39  ;;  %v554_v41 = vsub.f32 %v1632_v49, %v1700_v39  ;;  %v555_v42 = vsub.f32 %v1634_v50, %v1700_v39  ;;  %v556_v43 = vsub.f32 %v1636_v51, %v1700_v39  ;;  %673 = vst.msk [vmem:[%s1565_s30 + $0x30] sm:$0xff] %vm570_vm2, %v1642_v54 }
 0x211   : > { %v557_v48 = vsub.f32 %v1638_v52, %v1700_v39  ;;  %674 = vst.msk [vmem:[%s1565_s30 + $0x38] sm:$0xff] %vm570_vm2, %v1644_v55  ;;  %v558_v51 = vsub.f32 %v1640_v53, %v1700_v39  ;;  %v559_v4 = vsub.f32 %v1642_v54, %v1700_v39  ;;  %v560_v7 = vsub.f32 %v1644_v55, %v1700_v39 }
 0x212   : > { %v571_v44 = vsel %vm570_vm2, %v553_v40, 0.0  ;;  %v572_v45 = vsel %vm570_vm2, %v554_v41, 0.0  ;;  %v574_v46 = vsel %vm570_vm2, %v555_v42, 0.0  ;;  %v576_v49 = vsel %vm570_vm2, %v556_v43, 0.0  ;;  %675 = vst.msk [vmem:[%s1565_s30 + $0x40] sm:$0xff] %vm570_vm2, %v1646_v56 }
 0x213   : > { %v573_v47 = vadd.f32 %v572_v45, %v571_v44  ;;  %v578_v0 = vsel %vm570_vm2, %v557_v48, 0.0  ;;  %676 = vst.msk [vmem:[%s1565_s30 + $0x48] sm:$0xff] %vm570_vm2, %v1648_v57  ;;  %v612_v1 = vmul.f32 %v553_v40, %v553_v40  ;;  %v613_v2 = vmul.f32 %v554_v41, %v554_v41 }
 0x214   : > { %v614_v3 = vmul.f32 %v555_v42, %v555_v42  ;;  %v580_v5 = vsel %vm570_vm2, %v558_v51, 0.0  ;;  %677 = vst.msk [vmem:[%s1565_s30 + $0x50] sm:$0xff] %vm570_vm2, %v1650_v58  ;;  %v615_v6 = vmul.f32 %v556_v43, %v556_v43  ;;  %v582_v8 = vsel %vm570_vm2, %v559_v4, 0.0 }
 0x215   : > { %v575_v50 = vadd.f32 %v574_v46, %v573_v47  ;;  %678 = vst.msk [vmem:[%s1565_s30 + $0x58] sm:$0xff] %vm570_vm2, %v1652_v59  ;;  %v616_v54 = vmul.f32 %v557_v48, %v557_v48  ;;  %v628_v10 = vsel %vm570_vm2, %v612_v1, 0.0  ;;  %v629_v11 = vsel %vm570_vm2, %v613_v2, 0.0 }
 0x216   : > { %679 = vst.msk [vmem:[%s1565_s30 + $0x60] sm:$0xff] %vm570_vm2, %v1654_v60  ;;  %v631_v12 = vsel %vm570_vm2, %v614_v3, 0.0  ;;  %v561_v13 = vsub.f32 %v1646_v56, %v1700_v39  ;;  %v584_v55 = vsel %vm570_vm2, %v560_v7, 0.0  ;;  %v630_v14 = vadd.f32 %v629_v11, %v628_v10 }
 0x217   : > { %v577_v52 = vadd.f32 %v576_v49, %v575_v50  ;;  %680 = vst.msk [vmem:[%s1565_s30 + $0x68] sm:$0xff] %vm570_vm2, %v1656_v61  ;;  %v617_v16 = vmul.f32 %v558_v51, %v558_v51  ;;  %v633_v17 = vsel %vm570_vm2, %v615_v6, 0.0  ;;  %v562_v18 = vsub.f32 %v1648_v57, %v1700_v39 }
 0x218   : > { %681 = vst.msk [vmem:[%s1565_s30 + $0x70] sm:$0xff] %vm570_vm2, %v1658_v62  ;;  %v586_v19 = vsel %vm570_vm2, %v561_v13, 0.0  ;;  %v632_v20 = vadd.f32 %v631_v12, %v630_v14  ;;  %v618_v21 = vmul.f32 %v559_v4, %v559_v4  ;;  %v635_v22 = vsel %vm570_vm2, %v616_v54, 0.0 }
 0x219   : > { %v579_v53 = vadd.f32 %v578_v0, %v577_v52  ;;  %682 = vst.msk [vmem:[%s1565_s30 + $0x78] sm:$0xff] %vm570_vm2, %v1660_v63  ;;  %v563_v23 = vsub.f32 %v1650_v58, %v1700_v39  ;;  %v588_v24 = vsel %vm570_vm2, %v562_v18, 0.0  ;;  %v619_v27 = vmul.f32 %v560_v7, %v560_v7 }
 0x21a   : > { %v634_v25 = vadd.f32 %v633_v17, %v632_v20  ;;  %v637_v28 = vsel %vm570_vm2, %v617_v16, 0.0  ;;  %v564_v57 = vsub.f32 %v1652_v59, %v1700_v39  ;;  %v620_v32 = vmul.f32 %v561_v13, %v561_v13 }
 0x21b   : > { %v581_v9 = vadd.f32 %v580_v5, %v579_v53  ;;  %v590_v29 = vsel %vm570_vm2, %v563_v23, 0.0  ;;  %v639_v33 = vsel %vm570_vm2, %v618_v21, 0.0  ;;  %v565_v58 = vsub.f32 %v1654_v60, %v1700_v39 }
 0x21c   : > { %v636_v30 = vadd.f32 %v635_v22, %v634_v25  ;;  %v592_v34 = vsel %vm570_vm2, %v564_v57, 0.0  ;;  %v621_v37 = vmul.f32 %v562_v18, %v562_v18  ;;  %v641_v38 = vsel %vm570_vm2, %v619_v27, 0.0 }
 0x21d   : > { %v583_v15 = vadd.f32 %v582_v8, %v581_v9  ;;  %v566_v59 = vsub.f32 %v1656_v61, %v1700_v39  ;;  %v594_v40 = vsel %vm570_vm2, %v565_v58, 0.0  ;;  %v622_v43 = vmul.f32 %v563_v23, %v563_v23 }
 0x21e   : > { %v638_v35 = vadd.f32 %v637_v28, %v636_v30  ;;  %v643_v44 = vsel %vm570_vm2, %v620_v32, 0.0  ;;  %v567_v60 = vsub.f32 %v1658_v62, %v1700_v39  ;;  %v623_v48 = vmul.f32 %v564_v57, %v564_v57 }
 0x21f   : > { %v585_v56 = vadd.f32 %v584_v55, %v583_v15  ;;  %v596_v45 = vsel %vm570_vm2, %v566_v59, 0.0  ;;  %v645_v49 = vsel %vm570_vm2, %v621_v37, 0.0  ;;  %v568_v61 = vsub.f32 %v1660_v63, %v1700_v39 }
 0x220   : > { %v640_v41 = vadd.f32 %v639_v33, %v638_v35  ;;  %v598_v50 = vsel %vm570_vm2, %v567_v60, 0.0  ;;  %v624_v52 = vmul.f32 %v565_v58, %v565_v58  ;;  %v647_v1 = vsel %vm570_vm2, %v622_v43, 0.0 }
 0x221   : > { %v587_v26 = vadd.f32 %v586_v19, %v585_v56  ;;  %v600_v2 = vsel %vm570_vm2, %v568_v61, 0.0  ;;  %v625_v4 = vmul.f32 %v566_v59, %v566_v59  ;;  %v649_v5 = vsel %vm570_vm2, %v623_v48, 0.0  ;;  %v569_v19 = vld [vmem:[#allocation3] sm:$0x1] }
 0x222   : > { %v642_v46 = vadd.f32 %v641_v38, %v640_v41  ;;  %v626_v7 = vmul.f32 %v567_v60, %v567_v60  ;;  %v651_v8 = vsel %vm570_vm2, %v624_v52, 0.0  ;;  %v627_v54 = vmul.f32 %v568_v61, %v568_v61 }
 0x223   : > { %v589_v31 = vadd.f32 %v588_v24, %v587_v26  ;;  %v653_v9 = vsel %vm570_vm2, %v625_v4, 0.0  ;;  %v611_v26 = vld [vmem:[#allocation4] sm:$0x1] }
 0x224   : > { %v644_v51 = vadd.f32 %v643_v44, %v642_v46  ;;  %v655_v12 = vsel %vm570_vm2, %v626_v7, 0.0  ;;  %v657_v14 = vsel %vm570_vm2, %v627_v54, 0.0 }
 0x225   : > { %v591_v36 = vadd.f32 %v590_v29, %v589_v31 }
 0x226   : > { %v646_v62 = vadd.f32 %v645_v49, %v644_v51 }
 0x227   : > { %v593_v42 = vadd.f32 %v592_v34, %v591_v36 }
 0x228   : > { %v648_v53 = vadd.f32 %v647_v1, %v646_v62 }
 0x229   : > { %v595_v47 = vadd.f32 %v594_v40, %v593_v42 }
 0x22a   : > { %v650_v63 = vadd.f32 %v649_v5, %v648_v53 }
 0x22b   : > { %v597_v0 = vadd.f32 %v596_v45, %v595_v47 }
 0x22c   : > { %v652_v10 = vadd.f32 %v651_v8, %v650_v63 }
 0x22d   : > { %v599_v3 = vadd.f32 %v598_v50, %v597_v0 }
 0x22e   : > { %v654_v13 = vadd.f32 %v653_v9, %v652_v10 }
 0x22f   : > { %v601_v6 = vadd.f32 %v600_v2, %v599_v3 }
 0x230   : > { %v656_v15 = vadd.f32 %v655_v12, %v654_v13 }
 0x231   : > { %v602_v39 = vrot.slane %v601_v6, 4 }
 0x232   : > { %v658_v17 = vadd.f32 %v657_v14, %v656_v15 }
 0x233   : > { %v603_v11 = vadd.f32 %v602_v39, %v601_v6 }
 0x234   : > { %v659_v20 = vrot.slane %v658_v17, 4 }
 0x235   : > { %v604_v55 = vrot.slane %v603_v11, 2 }
 0x236   : > { %v660_v21 = vadd.f32 %v659_v20, %v658_v17 }
 0x237   : > { %v605_v16 = vadd.f32 %v604_v55, %v603_v11 }
 0x238   : > { %v661_v23 = vrot.slane %v660_v21, 2 }
 0x239   : > { %v606_v18 = vrot.slane %v605_v16, 1 }
 0x23a   : > { %v662_v24 = vadd.f32 %v661_v23, %v660_v21 }
 0x23b   : > { %v607_v56 = vadd.f32 %v606_v18, %v605_v16 }
 0x23c   : > { %v663_v25 = vrot.slane %v662_v24, 1 }
 0x23d   : > { %v608_v22 = vadd.f32 %v607_v56, %v569_v19 }
 0x23e   : > { %v664_v27 = vadd.f32 %v663_v25, %v662_v24  ;;  %686 = sbr.rel (%p1029_p10) target bundleno = 1146 (0x47a), region = 56 }
 0x23f   : > { %610 = vst.msk [vmem:[#allocation3] sm:$0x1] %vm609_vm3, %v608_v22 }
 0x240   : > { %v665_v28 = vadd.f32 %v664_v27, %v611_v26 }
 0x242   : > { %666 = vst.msk [vmem:[#allocation4] sm:$0x1] %vm609_vm3, %v665_v28 }
 0x243   : > { %v693_v57 = vld [vmem:[%s1921_s2 + $0x18] sm:$0xff]  ;;  %v692_v29 = vld [vmem:[%s1921_s2 + $0x10] sm:$0xff]  ;;  %v687_v30 = vld [vmem:[#allocation2] sm:$0x1]  ;;  %vm732_vm4 = vcmask 1043456   ;;  %v1393_v36 = vmov 2048.0  }
 0x244   : > { %712 = vmatpush.msra.mxu0 %v693_v57  ;;  %778 = vmatpush.msra.mxu2 %v693_v57  ;;  %v691_v32 = vld [vmem:[%s1921_s2 + $0x8] sm:$0xff]  ;;  %v695_v33 = vmul.f32 256.0, %v687_v30  ;;  %v690_v58 = vld [vmem:[%s1921_s2] sm:$0xff]  ;;  %1199 = vrcp.f32 %v1393_v36  ;;  %vm728_vm6 = vcmask 31744  }
 0x245   : > { %v694_v35 = vld [vmem:[%s1922_s3] sm:$0xf] }
 0x246   : > { %v688_v31 = vld [vmem:[#allocation3] sm:$0x1]  ;;  %713 = vmatpush.msra.mxu0 %v692_v29  ;;  %779 = vmatpush.msra.mxu2 %v692_v29  ;;  %v822_v8 = vld [vmem:[%s1923_s4] sm:$0x1] }
 0x247   : > { %v696_v34 = vadd.f32 %v695_v33, %v688_v31  ;;  %1031 = vmatpush.msk.msra.mxu1 %vm732_vm4, %v694_v35  ;;  %1034 = vmatpush.msk.msra.mxu3 %vm732_vm4, %v694_v35  ;;  %v825_v54 = vld [vmem:[%s1952_s17] sm:$0x1] }
 0x248   : > { %714 = vmatpush.msra.mxu0 %v691_v32  ;;  %780 = vmatpush.msra.mxu2 %v691_v32 }
 0x249   : > { %v689_v48 = vld [vmem:[#allocation4] sm:$0x1] }
 0x24a   : > { %715 = vmatpush.msra.mxu0 %v690_v58  ;;  %781 = vmatpush.msra.mxu2 %v690_v58  ;;  %v1200_v37 = vpop.eup %1199 }
 0x24b   : > { %1030 = vmatmul.msk.f32.vlgmr.msra.gmra.mxu0 %vm570_vm2, %v696_v34  ;;  %v721_v38 = vmul.f32 2048.0, %v1200_v37  ;;  %vm725_vm5 = vweird.f32 %v1200_v37 }
 0x24d   : > { %v722_v59 = vsub.f32 1.0, %v721_v38 }
 0x24f   : > { %v723_v40 = vmul.f32 %v1200_v37, %v722_v59 }
 0x251   : > { %v724_v41 = vadd.f32 %v1200_v37, %v723_v40 }
 0x253   : > { %v726_v42 = vsel %vm725_vm5, %v1200_v37, %v724_v41 }
 0x2c8   : > { %v717_v43 = vpop.f32.mrf.mxu0 }
 0x2c9   : > { %v727_v44 = vmul.f32 %v726_v42, %v717_v43 }
 0x2cb   : > { %1032 = vmatmul.msk.f32.vlgmr.msra.gmra.mxu1 %vm728_vm6, %v727_v44 }
 0x348   : > { %v753_v60 = vpop.f32.mrf.mxu1 }
 0x349   : > { %v756_v45 = vsub.f32 %v687_v30, %v753_v60 }
 0x34b   : > { %v757_v46 = vmul.f32 2.0, %v756_v45  ;;  %v760_v47 = vmul.f32 256.0, %v756_v45 }
 0x34d   : > { %v758_v49 = vmul.f32 %v757_v46, %v688_v31  ;;  %v761_v50 = vmul.f32 %v760_v47, %v756_v45 }
 0x34f   : > { %v759_v61 = vadd.f32 %v758_v49, %v689_v48 }
 0x351   : > { %v762_v51 = vadd.f32 %v761_v50, %v759_v61 }
 0x353   : > { %1033 = vmatmul.msk.f32.vlgmr.msra.gmra.mxu2 %vm570_vm2, %v762_v51 }
 0x3d6   : > { %v783_v0 = vpop.f32.mrf.mxu2 }
 0x3d7   : > { %v786_v52 = vmul.f32 %v783_v0, %v726_v42 }
 0x3d9   : > { %v787_v1 = vmax.f32 %v786_v52, 0.0 }
 0x3db   : > { %v788_v2 = vadd.f32 1e-05, %v787_v1 }
 0x3dd   : > { %1201 = vrsqrt.f32 %v788_v2  ;;  %vm795_vm8 = vweird.f32 %v788_v2 }
 0x3e3   : > { %v1202_v62 = vpop.eup %1201 }
 0x3e4   : > { %v790_v3 = vmul.f32 %v1202_v62, %v788_v2  ;;  %vm796_vm7 = vweird.f32 %v1202_v62 }
 0x3e5   : > { %vm797_vm9 = vmor %vm795_vm8, %vm796_vm7 }
 0x3e6   : > { %v791_v4 = vmul.f32 %v1202_v62, %v790_v3 }
 0x3e8   : > { %v792_v5 = vmul.f32 0.5, %v791_v4 }
 0x3ea   : > { %v793_v53 = vsub.f32 1.5, %v792_v5 }
 0x3ec   : > { %v794_v6 = vmul.f32 %v1202_v62, %v793_v53 }
 0x3ee   : > { %v798_v7 = vsel %vm797_vm9, %v1202_v62, %v794_v6 }
 0x3ef   : > { %1035 = vmatmul.msk.f32.vlgmr.msra.gmra.mxu3 %vm728_vm6, %v798_v7 }
 0x472   : > { %v819_v63 = vpop.f32.mrf.mxu3 }
 0x473   : > { %v823_v39 = vmul.f32 %v822_v8, %v819_v63 }
 0x475   : > { %824 = vst.msk [vmem:[%s356_s26] sm:$0x1] %vm609_vm3, %v823_v39  ;;  %v826_v9 = vmul.f32 %v823_v39, %v753_v60 }
 0x477   : > { %v827_v10 = vsub.f32 %v825_v54, %v826_v9 }
 0x479   : > { %828 = vst.msk [vmem:[%s362_s19] sm:$0x1] %vm609_vm3, %v827_v10 }
 0x47a PF: > { %s1953_s25 = sld [smem:[#allocation23_spill]]  ;;  %s857_s29 = sshll.u32 %s356_s26, 4  ;;  %s858_s29 = int_to_ptr.vmem [resolvable:$true] %s857_s29 }
 0x47b   : > { %s839_s10 = scalar_lea.sflag [#allocation7], %s1556_s5 }
 0x480   : > { %s855_s8 = scalar_lea.hbm %s1953_s25, %s1375_s12  ;;  %s1253_s23 = scalar_lea.hbm %s1953_s25, 2 }
 0x481   : > { %s859_s11 = sshll.u32 %s855_s8, 4  ;;  %s860_s11 = int_to_ptr.hbm [resolvable:$true] %s859_s11 }
 0x482   : > { %s1247_s18 = sshra.s32 %s860_s11, 4  ;;  %s1248_s18 = int_to_ptr.hbm [resolvable:$true] %s1247_s18 }
 0x483   : > { %s1249_s22 = scalar_lea.hbm %s1248_s18, 1  ;;  %p1254_p1 = scmp.lt.s32.totalorder %s1248_s18, %s1953_s25 }
 0x484   : > { %p1250_p11 = scmp.ne.s32.totalorder %s1248_s18, %s1249_s22  ;;  %p1255_p4 = scmp.lt.s32.totalorder %s1253_s23, %s1249_s22 }
 0x486   : > { %p1251_p13 = pnand %p1250_p11, %p1521_p12  ;;  %p1256_p5 = por %p1255_p4, %p1254_p1 }
 0x488   : > { %p1252_p0 = pneg %p1251_p13 }
 0x48a   : > { %p1257_p6 = pnand %p1256_p5, %p1252_p0 }
 0x48c   : > { %1260 = shalt.err (!%p1257_p6)
}
 0x48d   : > { %1088 = dma.vmem_to_hbm [thread:$0]  (%p1521_p12), %s858_s29, 16, %s860_s11, %s839_s10  }
 0x48e   : > { %s1955_s21 = sld [smem:[#allocation24_spill]]  ;;  %s870_s24 = sshll.u32 %s362_s19, 4  ;;  %s871_s24 = int_to_ptr.vmem [resolvable:$true] %s870_s24 }
 0x48f   : > { %s843_s18 = scalar_lea.sflag [#allocation10], %s1556_s5 }
 0x494   : > { %s868_s8 = scalar_lea.hbm %s1955_s21, %s1375_s12  ;;  %s1281_s29 = scalar_lea.hbm %s1955_s21, 2 }
 0x495   : > { %s872_s16 = sshll.u32 %s868_s8, 4  ;;  %s873_s16 = int_to_ptr.hbm [resolvable:$true] %s872_s16 }
 0x496   : > { %s1275_s22 = sshra.s32 %s873_s16, 4  ;;  %s1276_s22 = int_to_ptr.hbm [resolvable:$true] %s1275_s22 }
 0x497   : > { %s1277_s23 = scalar_lea.hbm %s1276_s22, 1  ;;  %p1282_p7 = scmp.lt.s32.totalorder %s1276_s22, %s1955_s21 }
 0x498   : > { %p1278_p8 = scmp.ne.s32.totalorder %s1276_s22, %s1277_s23  ;;  %p1283_p10 = scmp.lt.s32.totalorder %s1281_s29, %s1277_s23 }
 0x49a   : > { %p1279_p3 = pnand %p1278_p8, %p1521_p12  ;;  %p1284_p11 = por %p1283_p10, %p1282_p7 }
 0x49c   : > { %p1280_p9 = pneg %p1279_p3 }
 0x49e   : > { %p1285_p13 = pnand %p1284_p11, %p1280_p9 }
 0x4a0   : > { %1288 = shalt.err (!%p1285_p13)
}
 0x4a1   : > { %1089 = dma.vmem_to_hbm [thread:$0]  (%p1521_p12), %s871_s24, 16, %s873_s16, %s843_s18  }
 0x4a2 PF: > { %p1104_p0 = scmp.ge.s32.totalorder %s1387_s15, 2  ;;  %s896_s5 = sand.u32 1, %s1347_s27  }
 0x4a3   : > { %s897_s19 = scalar_lea.sflag [#allocation7], %s896_s5 }
 0x4a4   : > { %p1097_p1 = pnand %p1104_p0, %p1534_p2 }
 0x4a6   : > { %p1098_p4 = pneg %p1097_p1 }
 0x4a8   : > { %1338 = dma.done.wait (%p1098_p4), %s897_s19, 16  }
 0x4a9   : > { %1340 = vsyncadd (%p1098_p4), %s897_s19, 4294967280  ;;  %s906_s26 = scalar_lea.sflag [#allocation10], %s896_s5 }
 0x4aa   : > { %1342 = dma.done.wait (%p1098_p4), %s906_s26, 16  }
 0x4ab   : > { %1344 = vsyncadd (%p1098_p4), %s906_s26, 4294967280  ;;  %s28_s15 = sadd.s32 1, %s1387_s15   ;;  %s1957_s7 = sld [smem:[#allocation14_spill]] }
 0x4ac   : > { %p25_p5 = scmp.ge.s32.totalorder %s28_s15, 6   ;;  %s1958_s29 = sld [smem:[#allocation19_spill]] }
 0x4ad   : > { %s1959_s8 = sld [smem:[#allocation15_spill]]  ;;  %s1963_s27 = smov %s1351_s28 }
 0x4ae   : > { %s1960_s10 = sld [smem:[#allocation20_spill]]  ;;  %s1965_s30 = smov %s1363_s9 }
 0x4af   : > { %s1961_s24 = sld [smem:[#allocation16_spill]]  ;;  %s1967_s11 = smov %s1379_s13 }
 0x4b0   : > { %s1962_s16 = sld [smem:[#allocation17_spill]]  ;;  %s1968_s12 = smov %s1383_s14 }
 0x4b1   : > { %s1964_s28 = smov %s1957_s7 }
 0x4b2   :  { %27 = sbr.rel (!%p25_p5) target bundleno = 15 (0xf), region = 126 }
 0x4b3   : > { %s1966_s9 = smov %s1959_s8 }
 0x4b5   : > { %s1969_s13 = smov %s1961_s24 }
 0x4b6   : > { %s1970_s14 = smov %s1962_s16 }
 0x4b7   :  { %911 = vsyncpa [#allocation6], 1 }
 0x4b8   :  { %913 = vsyncpa [#allocation6 + $0x1], 1 }
 0x4b9   :  { %914 = vsyncpa [#allocation7], 1 }
 0x4ba   :  { %916 = vsyncpa [#allocation7 + $0x1], 1 }
 0x4bb   :  { %917 = vsyncpa [#allocation10], 1 }
 0x4bc   :  { %919 = vsyncpa [#allocation10 + $0x1], 1 }

</bundles_post_ra>
